<compile_context>
chip_gen: v7x
topology: tpu7x:2x2x1
jax: 0.10.0
libtpu: 0.0.40
codegen_flags: <defaults>
</compile_context>

<pallas_src>
import functools
import math

import jax
import jax.numpy as jnp
from jax.experimental import pallas as pl
from jax.experimental.pallas import tpu as pltpu

CLAMP_MIN = -math.log(1_000_000.0)  # == -1 * np.log(1000000) in the reference

LANE = 128
SUBLANE = 8


def _round_up(x, m):
    return ((x + m - 1) // m) * m


def _cdiv(a, b):
    return -(-a // b)


# ----------------------------------------------------------------------------
# Fused Pallas kernel: all n_cyc cycles for one M-tile.
# ----------------------------------------------------------------------------
def _net_cycles_kernel(packed_ref, eps_ref, winv_ref, wt_ref, wds_ref,
                       lat1_ref, lat2_ref, half_ref, last_ref, trgrec_ref,
                       *, clamp_min):
    f32 = jnp.float32
    n_cyc = half_ref.shape[0]
    latp = wt_ref.shape[1] // 2          # padded latent width (multiple of 128)
    dop = wds_ref.shape[1]               # padded decoder-output width
    cdt = wt_ref.dtype                   # matmul input dtype (bf16 by default)

    wt = wt_ref[...]                     # [dop, 2*latp]  fused re-encode weight
    wds = wds_ref[...]                   # [latp, dop]    sampled -> decoder

    # One wide MXU pass computes every loop-invariant term plus the cycle-0
    # encoder output.  Biases are folded in via the constant-1 column of the
    # packed input, so there are no separate bias streams.
    #   inv = [ src_ct(dop) | trg_ct(dop) | cv_enc_ct(2*latp) | enc(feat)(2*latp) ]
    inv = jnp.dot(packed_ref[...], winv_ref[...], preferred_element_type=f32)
    src_ct = inv[:, :dop]
    trg_ct = inv[:, dop:2 * dop]
    cv_ct = inv[:, 2 * dop:2 * dop + 2 * latp]
    enc_feat = inv[:, 2 * dop + 2 * latp:]

    # TODO(synk): convert to lax.fori_loop(unroll=True) if n_cyc grows beyond ~4.
    dec_prev = None
    for c in range(n_cyc):
        # -- first half-cycle: enc -> clamp -> sample -> dec(trg), dec(src) --
        if c == 0:
            enc = enc_feat
        else:
            # enc(cat(cv_stats, dec_prev)) via split, fused mu|lv weights.
            enc = cv_ct + jnp.dot(dec_prev.astype(cdt), wt,
                                  preferred_element_type=f32)
        mu = enc[:, :latp]                              # lane-aligned slice: free
        lv = jnp.maximum(enc[:, latp:], clamp_min)      # torch.clamp on sigma half
        lat1_ref[c, :, :latp] = mu
        lat1_ref[c, :, latp:] = lv
        sampled = mu + jnp.exp(lv * 0.5) * eps_ref[2 * c].astype(f32)
        sp = jnp.dot(sampled.astype(cdt), wds, preferred_element_type=f32)
        dec_trg = trg_ct + sp                           # dec(cat(trg_code, sampled))
        half_ref[c] = src_ct + sp                       # dec(cat(src_code, sampled))
        if c == n_cyc - 1:                              # reference overwrites each
            trgrec_ref[...] = dec_trg                   # cycle; last one survives.

        # -- second half-cycle: re-encode cat(cv_stats, dec_trg) -> dec(src) --
        enc = cv_ct + jnp.dot(dec_trg.astype(cdt), wt, preferred_element_type=f32)
        mu = enc[:, :latp]
        lv = jnp.maximum(enc[:, latp:], clamp_min)
        lat2_ref[c, :, :latp] = mu
        lat2_ref[c, :, latp:] = lv
        sampled = mu + jnp.exp(lv * 0.5) * eps_ref[2 * c + 1].astype(f32)
        dec_prev = src_ct + jnp.dot(sampled.astype(cdt), wds,
                                    preferred_element_type=f32)
        last_ref[c] = dec_prev                          # feeds next cycle's encoder


# ----------------------------------------------------------------------------
# Wrapper: pack/pad inputs, build block weights, tile M, call the kernel.
# ----------------------------------------------------------------------------
def net_forward_with_eps(x, params, eps, n_cyc=2, tile_m=None,
                         io_dtype=jnp.bfloat16):
    feat = x["feat"]
    B, T, d_feat = feat.shape
    d_code = x["src_code"].shape[2]
    d_cv = x["cv_stats"].shape[2]
    w_enc, b_enc = params["w_enc"], params["b_enc"]
    w_dec, b_dec = params["w_dec"], params["b_dec"]
    lat = w_enc.shape[1] // 2
    d_out = w_dec.shape[1]
    assert d_cv + d_out == d_feat, "cv_stats + decoder output must match encoder input"
    assert w_dec.shape[0] == d_code + lat
    M = B * T
    assert eps.shape == (2 * n_cyc, M, lat)

    # Lane-dense (multiple-of-128) padded feature widths.
    latp = _round_up(lat, LANE)
    dop = _round_up(d_out, LANE)
    wout = 2 * dop + 4 * latp
    d_real = 2 * d_code + d_cv + d_feat + 1            # +1 = bias (ones) column
    dpack = _round_up(d_real, LANE)

    # ---- tile sizing / explicit VMEM accounting (generation aware) ----
    bpe = jnp.dtype(io_dtype).itemsize
    in_row = bpe * (dpack + 2 * n_cyc * latp)                       # streamed in
    out_row = 4 * (2 * n_cyc * 2 * latp + 2 * n_cyc * dop + dop)    # streamed out
    interm_row = 4 * (wout + 8 * max(2 * latp, dop))                # live f32 temps
    w_bytes = bpe * (dpack * wout + dop * 2 * latp + latp * dop)    # weight blocks

    try:
        vmem_cap = int(pltpu.get_tpu_info().vmem_capacity_bytes)
    except Exception:
        vmem_cap = 64 * 1024 * 1024   # conservative (v7x-sized) fallback
    budget = max(8 << 20, vmem_cap // 4)
    tile_cap = 2048 if vmem_cap >= (100 << 20) else (1024 if vmem_cap >= (48 << 20) else 512)

    m8 = _round_up(M, SUBLANE)
    if tile_m is None:
        by_budget = max(SUBLANE,
                        ((budget - 2 * w_bytes) // (2 * (in_row + out_row) + interm_row))
                        // SUBLANE * SUBLANE)
        by_split = _round_up(_cdiv(m8, 4), SUBLANE)     # keep >= 2 grid steps
        tile_m = max(SUBLANE, min(by_budget, tile_cap, by_split))
    m_pad = _round_up(m8, tile_m)
    grid = (m_pad // tile_m,)

    need = 2 * tile_m * (in_row + out_row) + tile_m * interm_row + 2 * w_bytes
    vmem_limit = int(min(vmem_cap - (2 << 20), max(32 << 20, int(1.5 * need))))

    # ---- packed input slab: [src | trg | cv | feat | 1 | 0-pad], bf16 ----
    src2 = x["src_code"].reshape(M, d_code)
    trg2 = x["trg_code"].reshape(M, d_code)
    cv2 = x["cv_stats"].reshape(M, d_cv)
    feat2 = feat.reshape(M, d_feat)
    ones = jnp.ones((M, 1), jnp.float32)
    packed = jnp.concatenate([src2, trg2, cv2, feat2, ones], axis=1)
    packed_p = jnp.pad(packed, ((0, m_pad - M), (0, dpack - d_real))).astype(io_dtype)
    eps_p = jnp.pad(eps, ((0, 0), (0, m_pad - M), (0, latp - lat))).astype(io_dtype)

    # ---- block-structured invariant weight (concats + biases eliminated) ----
    r_trg = d_code
    r_cv = 2 * d_code
    r_feat = 2 * d_code + d_cv
    r_one = 2 * d_code + d_cv + d_feat
    c_trg, c_cv, c_feat = dop, 2 * dop, 2 * dop + 2 * latp
    winv = jnp.zeros((dpack, wout), jnp.float32)
    winv = winv.at[:d_code, :d_out].set(w_dec[:d_code])
    winv = winv.at[r_trg:r_trg + d_code, c_trg:c_trg + d_out].set(w_dec[:d_code])
    winv = winv.at[r_cv:r_cv + d_cv, c_cv:c_cv + lat].set(w_enc[:d_cv, :lat])
    winv = winv.at[r_cv:r_cv + d_cv, c_cv + latp:c_cv + latp + lat].set(w_enc[:d_cv, lat:])
    winv = winv.at[r_feat:r_feat + d_feat, c_feat:c_feat + lat].set(w_enc[:, :lat])
    winv = winv.at[r_feat:r_feat + d_feat, c_feat + latp:c_feat + latp + lat].set(w_enc[:, lat:])
    winv = winv.at[r_one, :d_out].set(b_dec)
    winv = winv.at[r_one, c_trg:c_trg + d_out].set(b_dec)
    winv = winv.at[r_one, c_cv:c_cv + lat].set(b_enc[:lat])
    winv = winv.at[r_one, c_cv + latp:c_cv + latp + lat].set(b_enc[lat:])
    winv = winv.at[r_one, c_feat:c_feat + lat].set(b_enc[:lat])
    winv = winv.at[r_one, c_feat + latp:c_feat + latp + lat].set(b_enc[lat:])
    winv = winv.astype(io_dtype)

    # Fused mu|lv re-encode weight (decoder-output rows of w_enc) and sampled->dec.
    wt = jnp.zeros((dop, 2 * latp), jnp.float32)
    wt = wt.at[:d_out, :lat].set(w_enc[d_cv:, :lat])
    wt = wt.at[:d_out, latp:latp + lat].set(w_enc[d_cv:, lat:])
    wt = wt.astype(io_dtype)
    wds = jnp.zeros((latp, dop), jnp.float32).at[:lat, :d_out].set(w_dec[d_code:]).astype(io_dtype)

    def tile2(cols):
        return pl.BlockSpec((tile_m, cols), lambda i: (i, 0))

    def tile3(lead, cols):
        return pl.BlockSpec((lead, tile_m, cols), lambda i: (0, i, 0))

    def whole(shape):
        return pl.BlockSpec(shape, lambda i: (0,) * len(shape))

    in_specs = [
        tile2(dpack),                    # packed activation slab
        tile3(2 * n_cyc, latp),          # eps
        whole((dpack, wout)),            # invariant block weight
        whole((dop, 2 * latp)),          # fused re-encode weight
        whole((latp, dop)),              # sampled -> decoder weight
    ]
    out_specs = (
        tile3(n_cyc, 2 * latp),          # latent_1 (mu | clamped lv), fused
        tile3(n_cyc, 2 * latp),          # latent_2
        tile3(n_cyc, dop),               # reconst_half
        tile3(n_cyc, dop),               # reconst_last
        tile2(dop),                      # trg_reconst (last cycle)
    )
    out_shape = (
        jax.ShapeDtypeStruct((n_cyc, m_pad, 2 * latp), jnp.float32),
        jax.ShapeDtypeStruct((n_cyc, m_pad, 2 * latp), jnp.float32),
        jax.ShapeDtypeStruct((n_cyc, m_pad, dop), jnp.float32),
        jax.ShapeDtypeStruct((n_cyc, m_pad, dop), jnp.float32),
        jax.ShapeDtypeStruct((m_pad, dop), jnp.float32),
    )

    lat1, lat2, half, last, trgrec = pl.pallas_call(
        functools.partial(_net_cycles_kernel, clamp_min=CLAMP_MIN),
        grid=grid,
        in_specs=in_specs,
        out_specs=out_specs,
        out_shape=out_shape,
        compiler_params=pltpu.CompilerParams(
            dimension_semantics=("parallel",),
            vmem_limit_bytes=vmem_limit,
        ),
    )(packed_p, eps_p, winv, wt, wds)

    # Strip padding; re-assemble (mu, clamped logvar) latents; reshape to [B,T,*].
    def latent(a, c):
        return jnp.concatenate(
            [a[c, :M, :lat], a[c, :M, latp:latp + lat]], axis=-1
        ).reshape(B, T, 2 * lat)

    out = {
        "latent_1": [latent(lat1, c) for c in range(n_cyc)],
        "latent_2": [latent(lat2, c) for c in range(n_cyc)],
        "reconst_half": [half[c, :M, :d_out].reshape(B, T, d_out) for c in range(n_cyc)],
        "reconst_last": [last[c, :M, :d_out].reshape(B, T, d_out) for c in range(n_cyc)],
        "trg_reconst": trgrec[:M, :d_out].reshape(B, T, d_out),
    }
    return out


def net_forward(x, params, key, n_cyc=2):
    B, T = x["feat"].shape[:2]
    lat = params["w_enc"].shape[1] // 2
    eps = jax.random.normal(key, (2 * n_cyc, B * T, lat), jnp.float32)
    return net_forward_with_eps(x, params, eps, n_cyc=n_cyc)


# ----------------------------------------------------------------------------
# Pure-JAX reference (mirrors the PyTorch control flow literally).  The
# matmul_dtype argument applies the same bf16 rounding policy as the kernel so
# the comparison is tight; with f32 it is the literal full-precision reference.
# ----------------------------------------------------------------------------
def net_forward_ref(x, params, eps, n_cyc=2, clamp_min=CLAMP_MIN,
                    matmul_dtype=jnp.float32):
    f32 = jnp.float32
    md = matmul_dtype
    w_enc = params["w_enc"].astype(md)
    w_dec = params["w_dec"].astype(md)
    b_enc = params["b_enc"].astype(md).astype(f32)
    b_dec = params["b_dec"].astype(md).astype(f32)
    lat = params["w_enc"].shape[1] // 2
    B, T = x["feat"].shape[:2]
    eps_f = eps.astype(md).astype(f32)

    def enc(a):
        return jnp.einsum("btd,de->bte", a.astype(md), w_enc,
                          preferred_element_type=f32) + b_enc

    def dec(a):
        return jnp.einsum("btd,de->bte", a.astype(md), w_dec,
                          preferred_element_type=f32) + b_dec

    out = {"latent_1": [], "latent_2": [], "reconst_half": [], "reconst_last": []}
    encin = x["feat"]
    for c in range(n_cyc):
        e = enc(encin)
        e = jnp.concatenate([e[..., :lat], jnp.maximum(e[..., lat:], clamp_min)], -1)
        out["latent_1"].append(e)
        s = e[..., :lat] + jnp.exp(e[..., lat:] * 0.5) * eps_f[2 * c].reshape(B, T, lat)
        dec_trg = dec(jnp.concatenate([x["trg_code"], s], -1))
        out["trg_reconst"] = dec_trg
        out["reconst_half"].append(dec(jnp.concatenate([x["src_code"], s], -1)))
        e = enc(jnp.concatenate([x["cv_stats"], dec_trg], -1))
        e = jnp.concatenate([e[..., :lat], jnp.maximum(e[..., lat:], clamp_min)], -1)
        out["latent_2"].append(e)
        s = e[..., :lat] + jnp.exp(e[..., lat:] * 0.5) * eps_f[2 * c + 1].reshape(B, T, lat)
        dec_src = dec(jnp.concatenate([x["src_code"], s], -1))
        out["reconst_last"].append(dec_src)
        encin = jnp.concatenate([x["cv_stats"], dec_src], -1)
    return out


def init_params(key, d_enc_in, d_lat, d_code, d_dec_out):
    k1, k2, k3, k4 = jax.random.split(key, 4)
    d_dec_in = d_code + d_lat
    w_enc = jax.random.normal(k1, (d_enc_in, 2 * d_lat), jnp.float32) / jnp.sqrt(jnp.float32(d_enc_in))
    b_enc = 0.1 * jax.random.normal(k3, (2 * d_lat,), jnp.float32)
    w_dec = jax.random.normal(k2, (d_dec_in, d_dec_out), jnp.float32) / jnp.sqrt(jnp.float32(d_dec_in))
    b_dec = 0.1 * jax.random.normal(k4, (d_dec_out,), jnp.float32)
    return dict(w_enc=w_enc, b_enc=b_enc, w_dec=w_dec, b_dec=b_dec)


if __name__ == "__main__":
    # Small, self-consistent shapes:
    #   feat [B,T,32]; src/trg codes [B,T,8]; cv_stats [B,T,8];
    #   latent 16 -> enc out 32 = 2*16; decoder in 8+16=24 -> out 24
    #   (so cat(cv_stats[8], dec_out[24]) == 32 == encoder input).
    B, T = 2, 8
    D_FEAT, D_CODE, D_CV, D_LAT, D_DEC_OUT = 32, 8, 8, 16, 24
    N_CYC = 2
    assert D_CV + D_DEC_OUT == D_FEAT

    root = jax.random.PRNGKey(0)
    kp, kf, ks, kt, kc, ke = jax.random.split(root, 6)

    params = init_params(kp, D_FEAT, D_LAT, D_CODE, D_DEC_OUT)
    x = {
        "feat": jax.random.normal(kf, (B, T, D_FEAT), jnp.float32),
        "src_code": jax.random.normal(ks, (B, T, D_CODE), jnp.float32),
        "trg_code": jax.random.normal(kt, (B, T, D_CODE), jnp.float32),
        "cv_stats": jax.random.normal(kc, (B, T, D_CV), jnp.float32),
    }
    eps = jax.random.normal(ke, (2 * N_CYC, B * T, D_LAT), jnp.float32)

    fwd = jax.jit(functools.partial(net_forward_with_eps, n_cyc=N_CYC))
    out = fwd(x, params, eps)
    out = jax.tree_util.tree_map(jax.block_until_ready, out)

    # Shape / clamp sanity checks.
    assert out["latent_1"][0].shape == (B, T, 2 * D_LAT)
    assert out["latent_2"][1].shape == (B, T, 2 * D_LAT)
    assert out["reconst_half"][0].shape == (B, T, D_DEC_OUT)
    assert out["reconst_last"][1].shape == (B, T, D_DEC_OUT)
    assert out["trg_reconst"].shape == (B, T, D_DEC_OUT)
    assert float(jnp.min(out["latent_1"][0][:, :, D_LAT:])) >= CLAMP_MIN - 1e-6

    # Numerical check against the literal (concat-based) pure-JAX reference,
    # applying the same bf16-matmul / f32-accumulate policy as the kernel so
    # the tolerance reflects only split/packing reassociation, not precision.
    ref = net_forward_ref(x, params, eps, n_cyc=N_CYC, matmul_dtype=jnp.bfloat16)
    diffs = []
    for k in ["latent_1", "latent_2", "reconst_half", "reconst_last"]:
        for a, b in zip(out[k], ref[k]):
            diffs.append(float(jnp.max(jnp.abs(a - b))))
    diffs.append(float(jnp.max(jnp.abs(out["trg_reconst"] - ref["trg_reconst"]))))
    assert max(diffs) < 3e-2, f"mismatch vs reference: max abs diff = {max(diffs)}"

    print("KERNEL_OK")
</pallas_src>

<mosaic_0001>
module attributes {stable_mosaic.version = 11 : i64} {
  func.func @_net_cycles_kernel(%arg0: i32, %arg1: memref<8x128xbf16, #tpu.memory_space<vmem>>, %arg2: memref<4x8x128xbf16, #tpu.memory_space<vmem>>, %arg3: memref<128x768xbf16, #tpu.memory_space<vmem>>, %arg4: memref<128x256xbf16, #tpu.memory_space<vmem>>, %arg5: memref<128x128xbf16, #tpu.memory_space<vmem>>, %arg6: memref<2x8x256xf32, #tpu.memory_space<vmem>>, %arg7: memref<2x8x256xf32, #tpu.memory_space<vmem>>, %arg8: memref<2x8x128xf32, #tpu.memory_space<vmem>>, %arg9: memref<2x8x128xf32, #tpu.memory_space<vmem>>, %arg10: memref<8x128xf32, #tpu.memory_space<vmem>>) attributes {dimension_semantics = [#tpu.dimension_semantics<parallel>], iteration_bounds = array<i64: 2>, scalar_prefetch = 0 : i64, scratch_operands = 0 : i64, tpu.core_type = #tpu.core_type<tc>, window_params = [{transform_indices = @transform_0, window_bounds = array<i64: 8, 128>}, {transform_indices = @transform_1, window_bounds = array<i64: 4, 8, 128>}, {pipeline_mode = #tpu.pipeline_mode<synchronous>, transform_indices = @transform_2, window_bounds = array<i64: 128, 768>}, {pipeline_mode = #tpu.pipeline_mode<synchronous>, transform_indices = @transform_3, window_bounds = array<i64: 128, 256>}, {pipeline_mode = #tpu.pipeline_mode<synchronous>, transform_indices = @transform_4, window_bounds = array<i64: 128, 128>}, {transform_indices = @transform_5, window_bounds = array<i64: 2, 8, 256>}, {transform_indices = @transform_6, window_bounds = array<i64: 2, 8, 256>}, {transform_indices = @transform_7, window_bounds = array<i64: 2, 8, 128>}, {transform_indices = @transform_8, window_bounds = array<i64: 2, 8, 128>}, {transform_indices = @transform_9, window_bounds = array<i64: 8, 128>}]} {
    %c0 = arith.constant 0 : index
    %c0_0 = arith.constant 0 : index
    %0 = vector.load %arg4[%c0, %c0_0] : memref<128x256xbf16, #tpu.memory_space<vmem>>, vector<128x256xbf16>
    %c0_1 = arith.constant 0 : index
    %c0_2 = arith.constant 0 : index
    %1 = vector.load %arg5[%c0_1, %c0_2] : memref<128x128xbf16, #tpu.memory_space<vmem>>, vector<128x128xbf16>
    %c0_3 = arith.constant 0 : index
    %c0_4 = arith.constant 0 : index
    %2 = vector.load %arg1[%c0_3, %c0_4] : memref<8x128xbf16, #tpu.memory_space<vmem>>, vector<8x128xbf16>
    %c0_5 = arith.constant 0 : index
    %c0_6 = arith.constant 0 : index
    %3 = vector.load %arg3[%c0_5, %c0_6] : memref<128x768xbf16, #tpu.memory_space<vmem>>, vector<128x768xbf16>
    %cst = arith.constant dense<0.000000e+00> : vector<8x768xf32>
    %4 = tpu.matmul %2, %3, %cst {dimension_numbers = #tpu.dot_dimension_numbers<[1], [0], [0], [1], [0, 0, 1, 1], [], []>} : vector<8x128xbf16>, vector<128x768xbf16>, vector<8x768xf32> -> vector<8x768xf32>
    %5 = vector.extract_strided_slice %4 {offsets = [0, 0], sizes = [8, 128], strides = [1, 1]} : vector<8x768xf32> to vector<8x128xf32>
    %6 = vector.extract_strided_slice %4 {offsets = [0, 128], sizes = [8, 128], strides = [1, 1]} : vector<8x768xf32> to vector<8x128xf32>
    %7 = vector.extract_strided_slice %4 {offsets = [0, 256], sizes = [8, 256], strides = [1, 1]} : vector<8x768xf32> to vector<8x256xf32>
    %8 = vector.extract_strided_slice %4 {offsets = [0, 512], sizes = [8, 256], strides = [1, 1]} : vector<8x768xf32> to vector<8x256xf32>
    %9 = vector.extract_strided_slice %8 {offsets = [0, 0], sizes = [8, 128], strides = [1, 1]} : vector<8x256xf32> to vector<8x128xf32>
    %10 = vector.extract_strided_slice %8 {offsets = [0, 128], sizes = [8, 128], strides = [1, 1]} : vector<8x256xf32> to vector<8x128xf32>
    %cst_7 = arith.constant -13.8155107 : f32
    %11 = vector.broadcast %cst_7 : f32 to vector<8x128xf32>
    %12 = arith.maximumf %10, %11 : vector<8x128xf32>
    %c0_8 = arith.constant 0 : index
    %c0_9 = arith.constant 0 : index
    %c0_10 = arith.constant 0 : index
    %13 = vector.load %arg6[%c0_8, %c0_9, %c0_10] : memref<2x8x256xf32, #tpu.memory_space<vmem>>, vector<1x8x128xf32>
    %14 = vector.shape_cast %13 : vector<1x8x128xf32> to vector<8x128xf32>
    %15 = vector.shape_cast %9 : vector<8x128xf32> to vector<1x8x128xf32>
    tpu.vector_store %arg6[%c0_8, %c0_9, %c0_10], %15 {strides = array<i32>} : memref<2x8x256xf32, #tpu.memory_space<vmem>>, vector<1x8x128xf32>,
    %c0_11 = arith.constant 0 : index
    %c0_12 = arith.constant 0 : index
    %c128 = arith.constant 128 : index
    %16 = vector.load %arg6[%c0_11, %c0_12, %c128] : memref<2x8x256xf32, #tpu.memory_space<vmem>>, vector<1x8x128xf32>
    %17 = vector.shape_cast %16 : vector<1x8x128xf32> to vector<8x128xf32>
    %18 = vector.shape_cast %12 : vector<8x128xf32> to vector<1x8x128xf32>
    tpu.vector_store %arg6[%c0_11, %c0_12, %c128], %18 {strides = array<i32>} : memref<2x8x256xf32, #tpu.memory_space<vmem>>, vector<1x8x128xf32>,
    %cst_13 = arith.constant 5.000000e-01 : f32
    %19 = vector.broadcast %cst_13 : f32 to vector<8x128xf32>
    %20 = arith.mulf %12, %19 : vector<8x128xf32>
    %21 = math.exp %20 : vector<8x128xf32>
    %c0_14 = arith.constant 0 : index
    %c0_15 = arith.constant 0 : index
    %c0_16 = arith.constant 0 : index
    %22 = vector.load %arg2[%c0_14, %c0_15, %c0_16] : memref<4x8x128xbf16, #tpu.memory_space<vmem>>, vector<1x8x128xbf16>
    %23 = vector.shape_cast %22 : vector<1x8x128xbf16> to vector<8x128xbf16>
    %24 = arith.extf %23 : vector<8x128xbf16> to vector<8x128xf32>
    %25 = arith.mulf %21, %24 : vector<8x128xf32>
    %26 = arith.addf %9, %25 : vector<8x128xf32>
    %27 = arith.truncf %26 : vector<8x128xf32> to vector<8x128xbf16>
    %cst_17 = arith.constant dense<0.000000e+00> : vector<8x128xf32>
    %28 = tpu.matmul %27, %1, %cst_17 {dimension_numbers = #tpu.dot_dimension_numbers<[1], [0], [0], [1], [0, 0, 1, 1], [], []>} : vector<8x128xbf16>, vector<128x128xbf16>, vector<8x128xf32> -> vector<8x128xf32>
    %29 = arith.addf %6, %28 : vector<8x128xf32>
    %30 = arith.addf %5, %28 : vector<8x128xf32>
    %c0_18 = arith.constant 0 : index
    %c0_19 = arith.constant 0 : index
    %c0_20 = arith.constant 0 : index
    %31 = vector.load %arg8[%c0_18, %c0_19, %c0_20] : memref<2x8x128xf32, #tpu.memory_space<vmem>>, vector<1x8x128xf32>
    %32 = vector.shape_cast %31 : vector<1x8x128xf32> to vector<8x128xf32>
    %33 = vector.shape_cast %30 : vector<8x128xf32> to vector<1x8x128xf32>
    tpu.vector_store %arg8[%c0_18, %c0_19, %c0_20], %33 {strides = array<i32>} : memref<2x8x128xf32, #tpu.memory_space<vmem>>, vector<1x8x128xf32>,
    %34 = arith.truncf %29 : vector<8x128xf32> to vector<8x128xbf16>
    %cst_21 = arith.constant dense<0.000000e+00> : vector<8x256xf32>
    %35 = tpu.matmul %34, %0, %cst_21 {dimension_numbers = #tpu.dot_dimension_numbers<[1], [0], [0], [1], [0, 0, 1, 1], [], []>} : vector<8x128xbf16>, vector<128x256xbf16>, vector<8x256xf32> -> vector<8x256xf32>
    %36 = arith.addf %7, %35 : vector<8x256xf32>
    %37 = vector.extract_strided_slice %36 {offsets = [0, 0], sizes = [8, 128], strides = [1, 1]} : vector<8x256xf32> to vector<8x128xf32>
    %38 = vector.extract_strided_slice %36 {offsets = [0, 128], sizes = [8, 128], strides = [1, 1]} : vector<8x256xf32> to vector<8x128xf32>
    %cst_22 = arith.constant -13.8155107 : f32
    %39 = vector.broadcast %cst_22 : f32 to vector<8x128xf32>
    %40 = arith.maximumf %38, %39 : vector<8x128xf32>
    %c0_23 = arith.constant 0 : index
    %c0_24 = arith.constant 0 : index
    %c0_25 = arith.constant 0 : index
    %41 = vector.load %arg7[%c0_23, %c0_24, %c0_25] : memref<2x8x256xf32, #tpu.memory_space<vmem>>, vector<1x8x128xf32>
    %42 = vector.shape_cast %41 : vector<1x8x128xf32> to vector<8x128xf32>
    %43 = vector.shape_cast %37 : vector<8x128xf32> to vector<1x8x128xf32>
    tpu.vector_store %arg7[%c0_23, %c0_24, %c0_25], %43 {strides = array<i32>} : memref<2x8x256xf32, #tpu.memory_space<vmem>>, vector<1x8x128xf32>,
    %c0_26 = arith.constant 0 : index
    %c0_27 = arith.constant 0 : index
    %c128_28 = arith.constant 128 : index
    %44 = vector.load %arg7[%c0_26, %c0_27, %c128_28] : memref<2x8x256xf32, #tpu.memory_space<vmem>>, vector<1x8x128xf32>
    %45 = vector.shape_cast %44 : vector<1x8x128xf32> to vector<8x128xf32>
    %46 = vector.shape_cast %40 : vector<8x128xf32> to vector<1x8x128xf32>
    tpu.vector_store %arg7[%c0_26, %c0_27, %c128_28], %46 {strides = array<i32>} : memref<2x8x256xf32, #tpu.memory_space<vmem>>, vector<1x8x128xf32>,
    %cst_29 = arith.constant 5.000000e-01 : f32
    %47 = vector.broadcast %cst_29 : f32 to vector<8x128xf32>
    %48 = arith.mulf %40, %47 : vector<8x128xf32>
    %49 = math.exp %48 : vector<8x128xf32>
    %c1 = arith.constant 1 : index
    %c0_30 = arith.constant 0 : index
    %c0_31 = arith.constant 0 : index
    %50 = vector.load %arg2[%c1, %c0_30, %c0_31] : memref<4x8x128xbf16, #tpu.memory_space<vmem>>, vector<1x8x128xbf16>
    %51 = vector.shape_cast %50 : vector<1x8x128xbf16> to vector<8x128xbf16>
    %52 = arith.extf %51 : vector<8x128xbf16> to vector<8x128xf32>
    %53 = arith.mulf %49, %52 : vector<8x128xf32>
    %54 = arith.addf %37, %53 : vector<8x128xf32>
    %55 = arith.truncf %54 : vector<8x128xf32> to vector<8x128xbf16>
    %cst_32 = arith.constant dense<0.000000e+00> : vector<8x128xf32>
    %56 = tpu.matmul %55, %1, %cst_32 {dimension_numbers = #tpu.dot_dimension_numbers<[1], [0], [0], [1], [0, 0, 1, 1], [], []>} : vector<8x128xbf16>, vector<128x128xbf16>, vector<8x128xf32> -> vector<8x128xf32>
    %57 = arith.addf %5, %56 : vector<8x128xf32>
    %c0_33 = arith.constant 0 : index
    %c0_34 = arith.constant 0 : index
    %c0_35 = arith.constant 0 : index
    %58 = vector.load %arg9[%c0_33, %c0_34, %c0_35] : memref<2x8x128xf32, #tpu.memory_space<vmem>>, vector<1x8x128xf32>
    %59 = vector.shape_cast %58 : vector<1x8x128xf32> to vector<8x128xf32>
    %60 = vector.shape_cast %57 : vector<8x128xf32> to vector<1x8x128xf32>
    tpu.vector_store %arg9[%c0_33, %c0_34, %c0_35], %60 {strides = array<i32>} : memref<2x8x128xf32, #tpu.memory_space<vmem>>, vector<1x8x128xf32>,
    %61 = arith.truncf %57 : vector<8x128xf32> to vector<8x128xbf16>
    %cst_36 = arith.constant dense<0.000000e+00> : vector<8x256xf32>
    %62 = tpu.matmul %61, %0, %cst_36 {dimension_numbers = #tpu.dot_dimension_numbers<[1], [0], [0], [1], [0, 0, 1, 1], [], []>} : vector<8x128xbf16>, vector<128x256xbf16>, vector<8x256xf32> -> vector<8x256xf32>
    %63 = arith.addf %7, %62 : vector<8x256xf32>
    %64 = vector.extract_strided_slice %63 {offsets = [0, 0], sizes = [8, 128], strides = [1, 1]} : vector<8x256xf32> to vector<8x128xf32>
    %65 = vector.extract_strided_slice %63 {offsets = [0, 128], sizes = [8, 128], strides = [1, 1]} : vector<8x256xf32> to vector<8x128xf32>
    %cst_37 = arith.constant -13.8155107 : f32
    %66 = vector.broadcast %cst_37 : f32 to vector<8x128xf32>
    %67 = arith.maximumf %65, %66 : vector<8x128xf32>
    %c1_38 = arith.constant 1 : index
    %c0_39 = arith.constant 0 : index
    %c0_40 = arith.constant 0 : index
    %68 = vector.load %arg6[%c1_38, %c0_39, %c0_40] : memref<2x8x256xf32, #tpu.memory_space<vmem>>, vector<1x8x128xf32>
    %69 = vector.shape_cast %68 : vector<1x8x128xf32> to vector<8x128xf32>
    %70 = vector.shape_cast %64 : vector<8x128xf32> to vector<1x8x128xf32>
    tpu.vector_store %arg6[%c1_38, %c0_39, %c0_40], %70 {strides = array<i32>} : memref<2x8x256xf32, #tpu.memory_space<vmem>>, vector<1x8x128xf32>,
    %c1_41 = arith.constant 1 : index
    %c0_42 = arith.constant 0 : index
    %c128_43 = arith.constant 128 : index
    %71 = vector.load %arg6[%c1_41, %c0_42, %c128_43] : memref<2x8x256xf32, #tpu.memory_space<vmem>>, vector<1x8x128xf32>
    %72 = vector.shape_cast %71 : vector<1x8x128xf32> to vector<8x128xf32>
    %73 = vector.shape_cast %67 : vector<8x128xf32> to vector<1x8x128xf32>
    tpu.vector_store %arg6[%c1_41, %c0_42, %c128_43], %73 {strides = array<i32>} : memref<2x8x256xf32, #tpu.memory_space<vmem>>, vector<1x8x128xf32>,
    %cst_44 = arith.constant 5.000000e-01 : f32
    %74 = vector.broadcast %cst_44 : f32 to vector<8x128xf32>
    %75 = arith.mulf %67, %74 : vector<8x128xf32>
    %76 = math.exp %75 : vector<8x128xf32>
    %c2 = arith.constant 2 : index
    %c0_45 = arith.constant 0 : index
    %c0_46 = arith.constant 0 : index
    %77 = vector.load %arg2[%c2, %c0_45, %c0_46] : memref<4x8x128xbf16, #tpu.memory_space<vmem>>, vector<1x8x128xbf16>
    %78 = vector.shape_cast %77 : vector<1x8x128xbf16> to vector<8x128xbf16>
    %79 = arith.extf %78 : vector<8x128xbf16> to vector<8x128xf32>
    %80 = arith.mulf %76, %79 : vector<8x128xf32>
    %81 = arith.addf %64, %80 : vector<8x128xf32>
    %82 = arith.truncf %81 : vector<8x128xf32> to vector<8x128xbf16>
    %cst_47 = arith.constant dense<0.000000e+00> : vector<8x128xf32>
    %83 = tpu.matmul %82, %1, %cst_47 {dimension_numbers = #tpu.dot_dimension_numbers<[1], [0], [0], [1], [0, 0, 1, 1], [], []>} : vector<8x128xbf16>, vector<128x128xbf16>, vector<8x128xf32> -> vector<8x128xf32>
    %84 = arith.addf %6, %83 : vector<8x128xf32>
    %85 = arith.addf %5, %83 : vector<8x128xf32>
    %c1_48 = arith.constant 1 : index
    %c0_49 = arith.constant 0 : index
    %c0_50 = arith.constant 0 : index
    %86 = vector.load %arg8[%c1_48, %c0_49, %c0_50] : memref<2x8x128xf32, #tpu.memory_space<vmem>>, vector<1x8x128xf32>
    %87 = vector.shape_cast %86 : vector<1x8x128xf32> to vector<8x128xf32>
    %88 = vector.shape_cast %85 : vector<8x128xf32> to vector<1x8x128xf32>
    tpu.vector_store %arg8[%c1_48, %c0_49, %c0_50], %88 {strides = array<i32>} : memref<2x8x128xf32, #tpu.memory_space<vmem>>, vector<1x8x128xf32>,
    %c0_51 = arith.constant 0 : index
    %c0_52 = arith.constant 0 : index
    %89 = vector.load %arg10[%c0_51, %c0_52] : memref<8x128xf32, #tpu.memory_space<vmem>>, vector<8x128xf32>
    tpu.vector_store %arg10[%c0_51, %c0_52], %84 {strides = array<i32>} : memref<8x128xf32, #tpu.memory_space<vmem>>, vector<8x128xf32>,
    %90 = arith.truncf %84 : vector<8x128xf32> to vector<8x128xbf16>
    %cst_53 = arith.constant dense<0.000000e+00> : vector<8x256xf32>
    %91 = tpu.matmul %90, %0, %cst_53 {dimension_numbers = #tpu.dot_dimension_numbers<[1], [0], [0], [1], [0, 0, 1, 1], [], []>} : vector<8x128xbf16>, vector<128x256xbf16>, vector<8x256xf32> -> vector<8x256xf32>
    %92 = arith.addf %7, %91 : vector<8x256xf32>
    %93 = vector.extract_strided_slice %92 {offsets = [0, 0], sizes = [8, 128], strides = [1, 1]} : vector<8x256xf32> to vector<8x128xf32>
    %94 = vector.extract_strided_slice %92 {offsets = [0, 128], sizes = [8, 128], strides = [1, 1]} : vector<8x256xf32> to vector<8x128xf32>
    %cst_54 = arith.constant -13.8155107 : f32
    %95 = vector.broadcast %cst_54 : f32 to vector<8x128xf32>
    %96 = arith.maximumf %94, %95 : vector<8x128xf32>
    %c1_55 = arith.constant 1 : index
    %c0_56 = arith.constant 0 : index
    %c0_57 = arith.constant 0 : index
    %97 = vector.load %arg7[%c1_55, %c0_56, %c0_57] : memref<2x8x256xf32, #tpu.memory_space<vmem>>, vector<1x8x128xf32>
    %98 = vector.shape_cast %97 : vector<1x8x128xf32> to vector<8x128xf32>
    %99 = vector.shape_cast %93 : vector<8x128xf32> to vector<1x8x128xf32>
    tpu.vector_store %arg7[%c1_55, %c0_56, %c0_57], %99 {strides = array<i32>} : memref<2x8x256xf32, #tpu.memory_space<vmem>>, vector<1x8x128xf32>,
    %c1_58 = arith.constant 1 : index
    %c0_59 = arith.constant 0 : index
    %c128_60 = arith.constant 128 : index
    %100 = vector.load %arg7[%c1_58, %c0_59, %c128_60] : memref<2x8x256xf32, #tpu.memory_space<vmem>>, vector<1x8x128xf32>
    %101 = vector.shape_cast %100 : vector<1x8x128xf32> to vector<8x128xf32>
    %102 = vector.shape_cast %96 : vector<8x128xf32> to vector<1x8x128xf32>
    tpu.vector_store %arg7[%c1_58, %c0_59, %c128_60], %102 {strides = array<i32>} : memref<2x8x256xf32, #tpu.memory_space<vmem>>, vector<1x8x128xf32>,
    %cst_61 = arith.constant 5.000000e-01 : f32
    %103 = vector.broadcast %cst_61 : f32 to vector<8x128xf32>
    %104 = arith.mulf %96, %103 : vector<8x128xf32>
    %105 = math.exp %104 : vector<8x128xf32>
    %c3 = arith.constant 3 : index
    %c0_62 = arith.constant 0 : index
    %c0_63 = arith.constant 0 : index
    %106 = vector.load %arg2[%c3, %c0_62, %c0_63] : memref<4x8x128xbf16, #tpu.memory_space<vmem>>, vector<1x8x128xbf16>
    %107 = vector.shape_cast %106 : vector<1x8x128xbf16> to vector<8x128xbf16>
    %108 = arith.extf %107 : vector<8x128xbf16> to vector<8x128xf32>
    %109 = arith.mulf %105, %108 : vector<8x128xf32>
    %110 = arith.addf %93, %109 : vector<8x128xf32>
    %111 = arith.truncf %110 : vector<8x128xf32> to vector<8x128xbf16>
    %cst_64 = arith.constant dense<0.000000e+00> : vector<8x128xf32>
    %112 = tpu.matmul %111, %1, %cst_64 {dimension_numbers = #tpu.dot_dimension_numbers<[1], [0], [0], [1], [0, 0, 1, 1], [], []>} : vector<8x128xbf16>, vector<128x128xbf16>, vector<8x128xf32> -> vector<8x128xf32>
    %113 = arith.addf %5, %112 : vector<8x128xf32>
    %c1_65 = arith.constant 1 : index
    %c0_66 = arith.constant 0 : index
    %c0_67 = arith.constant 0 : index
    %114 = vector.load %arg9[%c1_65, %c0_66, %c0_67] : memref<2x8x128xf32, #tpu.memory_space<vmem>>, vector<1x8x128xf32>
    %115 = vector.shape_cast %114 : vector<1x8x128xf32> to vector<8x128xf32>
    %116 = vector.shape_cast %113 : vector<8x128xf32> to vector<1x8x128xf32>
    tpu.vector_store %arg9[%c1_65, %c0_66, %c0_67], %116 {strides = array<i32>} : memref<2x8x128xf32, #tpu.memory_space<vmem>>, vector<1x8x128xf32>,
    return
  }
  func.func @transform_0(%arg0: i32) -> (i32, i32) {
    %c0_i32 = arith.constant 0 : i32
    %c0_i32_0 = arith.constant 0 : i32
    return %arg0, %c0_i32 : i32, i32
  }
  func.func @transform_1(%arg0: i32) -> (i32, i32, i32) {
    %c0_i32 = arith.constant 0 : i32
    %c0_i32_0 = arith.constant 0 : i32
    %c0_i32_1 = arith.constant 0 : i32
    return %c0_i32, %arg0, %c0_i32_0 : i32, i32, i32
  }
  func.func @transform_2(%arg0: i32) -> (i32, i32) {
    %c0_i32 = arith.constant 0 : i32
    %c0_i32_0 = arith.constant 0 : i32
    %c0_i32_1 = arith.constant 0 : i32
    return %c0_i32, %c0_i32_0 : i32, i32
  }
  func.func @transform_3(%arg0: i32) -> (i32, i32) {
    %c0_i32 = arith.constant 0 : i32
    %c0_i32_0 = arith.constant 0 : i32
    %c0_i32_1 = arith.constant 0 : i32
    return %c0_i32, %c0_i32_0 : i32, i32
  }
  func.func @transform_4(%arg0: i32) -> (i32, i32) {
    %c0_i32 = arith.constant 0 : i32
    %c0_i32_0 = arith.constant 0 : i32
    %c0_i32_1 = arith.constant 0 : i32
    return %c0_i32, %c0_i32_0 : i32, i32
  }
  func.func @transform_5(%arg0: i32) -> (i32, i32, i32) {
    %c0_i32 = arith.constant 0 : i32
    %c0_i32_0 = arith.constant 0 : i32
    %c0_i32_1 = arith.constant 0 : i32
    return %c0_i32, %arg0, %c0_i32_0 : i32, i32, i32
  }
  func.func @transform_6(%arg0: i32) -> (i32, i32, i32) {
    %c0_i32 = arith.constant 0 : i32
    %c0_i32_0 = arith.constant 0 : i32
    %c0_i32_1 = arith.constant 0 : i32
    return %c0_i32, %arg0, %c0_i32_0 : i32, i32, i32
  }
  func.func @transform_7(%arg0: i32) -> (i32, i32, i32) {
    %c0_i32 = arith.constant 0 : i32
    %c0_i32_0 = arith.constant 0 : i32
    %c0_i32_1 = arith.constant 0 : i32
    return %c0_i32, %arg0, %c0_i32_0 : i32, i32, i32
  }
  func.func @transform_8(%arg0: i32) -> (i32, i32, i32) {
    %c0_i32 = arith.constant 0 : i32
    %c0_i32_0 = arith.constant 0 : i32
    %c0_i32_1 = arith.constant 0 : i32
    return %c0_i32, %arg0, %c0_i32_0 : i32, i32, i32
  }
  func.func @transform_9(%arg0: i32) -> (i32, i32) {
    %c0_i32 = arith.constant 0 : i32
    %c0_i32_0 = arith.constant 0 : i32
    return %arg0, %c0_i32 : i32, i32
  }
}

</mosaic_0001>

<bundles_post_ra>
// kernel: net_forward_with_eps.1
= control target key start
LH: loop header
LB: loop body
LE: loop exit
PB: predicated region body
PF: predicated region fallthrough
CT: control target
= control target key end

     0   :  { %s2133_s30 = smov 0   ;;  %s2135_s10 = smov 0   ;;  %s2687_s0 = inlined_call_operand.vmem [shape: bf16[16,128], index: 0, kind: input, shape index: {}]   ;;  %s2688_s1 = inlined_call_operand.vmem [shape: bf16[4,16,128], index: 1, kind: input, shape index: {}]   ;;  %s2689_s2 = inlined_call_operand.vmem [shape: bf16[128,768], index: 2, kind: input, shape index: {}]   ;;  %s2690_s3 = inlined_call_operand.vmem [shape: bf16[128,256], index: 3, kind: input, shape index: {}]   ;;  %s2691_s4 = inlined_call_operand.vmem [shape: bf16[128,128], index: 4, kind: input, shape index: {}]   ;;  %s2692_s5 = inlined_call_operand.vmem [shape: f32[2,16,256], index: 5, kind: output, shape index: {0}]   ;;  %s2693_s6 = inlined_call_operand.vmem [shape: f32[2,16,256], index: 6, kind: output, shape index: {1}]   ;;  %s2694_s7 = inlined_call_operand.vmem [shape: f32[2,16,128], index: 7, kind: output, shape index: {2}]   ;;  %s2695_s8 = inlined_call_operand.vmem [shape: f32[2,16,128], index: 8, kind: output, shape index: {3}]   ;;  %s2696_s9 = inlined_call_operand.vmem [shape: f32[16,128], index: 9, kind: output, shape index: {4}]  }
   0x1   :  { %s2137_s11 = smov 0  }
   0x2 LB: > { %s2149_s12 = sadd.s32 4294967295, %s2078_s11   ;;  %s2152_s13 = sadd.s32 1, %s2078_s11   ;;  %s2078_s11 = sphi %s2137_s11, %s2700_s11   ;;  %s2074_s10 = sphi %s2135_s10, %s2699_s10   ;;  %s2070_s30 = sphi %s2133_s30, %s2698_s30  }
   0x3   : > { %s50_s14 = ssub.s32 %s2078_s11, %s2152_s13  ;;  %s53_s15 = sadd.s32 1, %s2074_s10 }
   0x4   : > { %p51_p0 = scmp.eq.s32.totalorder %s50_s14, 0  ;;  %p60_p1 = scmp.ne.s32.totalorder %s2074_s10, %s2070_s30 }
   0x5   : > { %p61_p2 = scmp.eq.s32.totalorder %s2078_s11, 0  ;;  %p153_p3 = scmp.eq.s32.totalorder %s2149_s12, 1 }
   0x6   : > { %s2162_s16 = scalar_select %p51_p0, %s2074_s10, %s53_s15  }
   0x7   : > { %p62_p4 = por %p61_p2, %p60_p1  ;;  %p2164_p5 = por %p153_p3, %p60_p1 }
   0x8   : > { %p1695_p6 = scmp.ge.s32.totalorder %s2078_s11, 2 }
   0xa   : > { %288 = sbr.rel (%p1695_p6) target bundleno = 24 (0x18), region = 28 }
  0x11   : > { %298 = sbr.rel (!%p62_p4) target bundleno = 24 (0x18), region = 36  ;;  %s300_s18 = sand.u32 (%p62_p4), 1, %s2074_s10  }
  0x12   : > { %s1697_s19 = sshll.u32 (%p62_p4), %s2078_s11, 2  ;;  %s1696_s20 = sshll.u32 (%p62_p4), %s300_s18, 4 }
  0x13   : > { %s304_s23 = scalar_lea.vmem (%p62_p4), %s2688_s1, %s1697_s19  ;;  %s302_s24 = scalar_lea.vmem (%p62_p4), [#allocation2], %s1696_s20 }
  0x14   : > { %v320_v0 = vld [vmem:[%s304_s23] sm:$0xf] (%p62_p4)  ;;  %v322_v1 = vld [vmem:[%s304_s23 + $0x8] sm:$0xf] (%p62_p4)  ;;  %v324_v2 = vld [vmem:[%s304_s23 + $0x10] sm:$0xf] (%p62_p4) }
  0x15   : > { %321 = vst [vmem:[%s302_s24] sm:$0xf] (%p62_p4), %v320_v0  ;;  %323 = vst [vmem:[%s302_s24 + $0x4] sm:$0xf] (%p62_p4), %v322_v1  ;;  %v326_v3 = vld [vmem:[%s304_s23 + $0x18] sm:$0xf] (%p62_p4) }
  0x16   : > { %325 = vst [vmem:[%s302_s24 + $0x8] sm:$0xf] (%p62_p4), %v324_v2  ;;  %327 = vst [vmem:[%s302_s24 + $0xc] sm:$0xf] (%p62_p4), %v326_v3 }
  0x18 PF: > { %p1698_p7 = scmp.ge.s32.totalorder %s2078_s11, 1  ;;  %p357_p8 = scmp.lt.s32.totalorder %s2078_s11, 3 }
  0x1a   : > { %p358_p9 = pnand %p1698_p7, %p357_p8 }
  0x1b   : > { %v1944_v4 = vld [vmem:[%s2689_s2 + $0x4] ss:$24 sps:$4 sm:$0xff] (!%p358_p9)   ;;  %v1946_v5 = vld [vmem:[%s2689_s2] ss:$24 sps:$4 sm:$0xff] (!%p358_p9)   ;;  %v2080_v6 = vmov (!%p358_p9), 0   ;;  %p418_p10 = scmp.lt.s32.totalorder (!%p358_p9), %s2149_s12, 1 }
  0x1c   : > { %361 = sbr.rel (%p358_p9) target bundleno = 1927 (0x787), region = 77  ;;  %780 = vmatprep.mubr.bf16.mxu0 (!%p358_p9), %v2080_v6  ;;  %821 = vmatprep.mubr.bf16.mxu1 (!%p358_p9), %v2080_v6  ;;  %v1947_v7 = vld [vmem:[%s2689_s2 + $0x34] ss:$24 sps:$4 sm:$0xff] (!%p358_p9)   ;;  %v1949_v8 = vld [vmem:[%s2689_s2 + $0x30] ss:$24 sps:$4 sm:$0xff] (!%p358_p9)   ;;  %v2339_v54 = vld [vmem:[%s2691_s4] sm:$0xff] (!%p358_p9)  }
  0x1d   : > { %748 = vmatprep.subr.bf16.mxu0 (!%p358_p9), %v1944_v4  ;;  %v1950_v9 = vld [vmem:[%s2689_s2 + $0x64] ss:$24 sps:$4 sm:$0xff] (!%p358_p9)   ;;  %v1952_v10 = vld [vmem:[%s2689_s2 + $0x60] ss:$24 sps:$4 sm:$0xff] (!%p358_p9)   ;;  %v1953_v11 = vld [vmem:[%s2689_s2 + $0x94] ss:$24 sps:$4 sm:$0xff] (!%p358_p9)  }
  0x1e   : > { %749 = vmatpush1.bf16.msra.mxu0 (!%p358_p9), %v1946_v5  ;;  %v1955_v12 = vld [vmem:[%s2689_s2 + $0x90] ss:$24 sps:$4 sm:$0xff] (!%p358_p9)   ;;  %v1956_v13 = vld [vmem:[%s2689_s2 + $0xc4] ss:$24 sps:$4 sm:$0xff] (!%p358_p9)   ;;  %v1958_v14 = vld [vmem:[%s2689_s2 + $0xc0] ss:$24 sps:$4 sm:$0xff] (!%p358_p9)  }
  0x1f   : > { %750 = vmatprep.subr.bf16.mxu0 (!%p358_p9), %v1947_v7  ;;  %v1959_v15 = vld [vmem:[%s2689_s2 + $0xf4] ss:$24 sps:$4 sm:$0xff] (!%p358_p9)   ;;  %v1961_v16 = vld [vmem:[%s2689_s2 + $0xf0] ss:$24 sps:$4 sm:$0xff] (!%p358_p9)   ;;  %v1962_v17 = vld [vmem:[%s2689_s2 + $0x124] ss:$24 sps:$4 sm:$0xff] (!%p358_p9)  }
  0x20   : > { %v1964_v18 = vld [vmem:[%s2689_s2 + $0x120] ss:$24 sps:$4 sm:$0xff] (!%p358_p9)   ;;  %v1965_v19 = vld [vmem:[%s2689_s2 + $0x154] ss:$24 sps:$4 sm:$0xff] (!%p358_p9)   ;;  %v1967_v24 = vld [vmem:[%s2689_s2 + $0x150] ss:$24 sps:$4 sm:$0xff] (!%p358_p9)  }
  0x21   : > { %v1992_v20 = vld [vmem:[%s2689_s2 + $0xc] ss:$24 sps:$4 sm:$0xff] (!%p358_p9)   ;;  %v1994_v21 = vld [vmem:[%s2689_s2 + $0x8] ss:$24 sps:$4 sm:$0xff] (!%p358_p9)   ;;  %v1995_v22 = vld [vmem:[%s2689_s2 + $0x3c] ss:$24 sps:$4 sm:$0xff] (!%p358_p9)  }
  0x22   : > { %751 = vmatpush1.bf16.msra.mxu0 (!%p358_p9), %v1949_v8  ;;  %789 = vmatprep.subr.bf16.mxu1 (!%p358_p9), %v1992_v20  ;;  %v1997_v23 = vld [vmem:[%s2689_s2 + $0x38] ss:$24 sps:$4 sm:$0xff] (!%p358_p9)   ;;  %v1998_v25 = vld [vmem:[%s2689_s2 + $0x6c] ss:$24 sps:$4 sm:$0xff] (!%p358_p9)   ;;  %v2000_v43 = vld [vmem:[%s2689_s2 + $0x68] ss:$24 sps:$4 sm:$0xff] (!%p358_p9)  }
  0x23   : > { %752 = vmatprep.subr.bf16.mxu0 %v1950_v9  ;;  %s2216_s19 = scalar_select %p418_p10, %s2149_s12, 1  ;;  %790 = vmatpush1.bf16.msra.mxu1 %v1994_v21  ;;  %v1970_v26 = vld [vmem:[%s2689_s2 + $0x14] ss:$24 sps:$4 sm:$0xff]   ;;  %v1968_v28 = vld [vmem:[%s2689_s2 + $0x10] ss:$24 sps:$4 sm:$0xff]   ;;  %v2081_v55 = vmov 0.0  }
  0x24   : > { %791 = vmatprep.subr.bf16.mxu1 %v1995_v22  ;;  %v1973_v29 = vld [vmem:[%s2689_s2 + $0x44] ss:$24 sps:$4 sm:$0xff]   ;;  %v1971_v30 = vld [vmem:[%s2689_s2 + $0x40] ss:$24 sps:$4 sm:$0xff]   ;;  %v1976_v31 = vld [vmem:[%s2689_s2 + $0x74] ss:$24 sps:$4 sm:$0xff]  }
  0x25   : > { %s1704_s14 = sshll.u32 %s2216_s19, 2  ;;  %v1974_v32 = vld [vmem:[%s2689_s2 + $0x70] ss:$24 sps:$4 sm:$0xff]   ;;  %v1979_v33 = vld [vmem:[%s2689_s2 + $0xa4] ss:$24 sps:$4 sm:$0xff]   ;;  %vm2082_vm0 = vmmov 0  }
  0x26   : > { %753 = vmatpush1.bf16.msra.mxu0 %v1952_v10  ;;  %s421_s27 = scalar_lea.vmem %s2687_s0, %s1704_s14  ;;  %v1977_v34 = vld [vmem:[%s2689_s2 + $0xa0] ss:$24 sps:$4 sm:$0xff]   ;;  %v1982_v35 = vld [vmem:[%s2689_s2 + $0xd4] ss:$24 sps:$4 sm:$0xff]   ;;  %v1980_v36 = vld [vmem:[%s2689_s2 + $0xd0] ss:$24 sps:$4 sm:$0xff]  }
  0x27   : > { %754 = vmatprep.subr.bf16.mxu0 %v1953_v11  ;;  %v2252_v27 = vld [vmem:[%s421_s27] sm:$0xf]  ;;  %792 = vmatpush1.bf16.msra.mxu1 %v1997_v23  ;;  %v1985_v37 = vld [vmem:[%s2689_s2 + $0x104] ss:$24 sps:$4 sm:$0xff]   ;;  %v1988_v39 = vld [vmem:[%s2689_s2 + $0x134] ss:$24 sps:$4 sm:$0xff]  }
  0x28   : > { %793 = vmatprep.subr.bf16.mxu1 %v1998_v25  ;;  %v1983_v38 = vld [vmem:[%s2689_s2 + $0x100] ss:$24 sps:$4 sm:$0xff]   ;;  %v1986_v40 = vld [vmem:[%s2689_s2 + $0x130] ss:$24 sps:$4 sm:$0xff]   ;;  %v1991_v41 = vld [vmem:[%s2689_s2 + $0x164] ss:$24 sps:$4 sm:$0xff]  }
  0x29   : > { %v1989_v42 = vld [vmem:[%s2689_s2 + $0x160] ss:$24 sps:$4 sm:$0xff]   ;;  %v2001_v44 = vld [vmem:[%s2689_s2 + $0x9c] ss:$24 sps:$4 sm:$0xff]   ;;  %v2004_v46 = vld [vmem:[%s2689_s2 + $0xcc] ss:$24 sps:$4 sm:$0xff]  }
  0x2a   : > { %755 = vmatpush1.bf16.msra.mxu0 %v1955_v12  ;;  %v2003_v45 = vld [vmem:[%s2689_s2 + $0x98] ss:$24 sps:$4 sm:$0xff]   ;;  %v2006_v47 = vld [vmem:[%s2689_s2 + $0xc8] ss:$24 sps:$4 sm:$0xff]   ;;  %v2007_v48 = vld [vmem:[%s2689_s2 + $0xfc] ss:$24 sps:$4 sm:$0xff]  }
  0x2b   : > { %756 = vmatprep.subr.bf16.mxu0 %v1956_v13  ;;  %794 = vmatpush1.bf16.msra.mxu1 %v2000_v43  ;;  %v2009_v49 = vld [vmem:[%s2689_s2 + $0xf8] ss:$24 sps:$4 sm:$0xff]   ;;  %v2010_v50 = vld [vmem:[%s2689_s2 + $0x12c] ss:$24 sps:$4 sm:$0xff]   ;;  %v2012_v51 = vld [vmem:[%s2689_s2 + $0x128] ss:$24 sps:$4 sm:$0xff]  }
  0x2c   : > { %795 = vmatprep.subr.bf16.mxu1 %v2001_v44  ;;  %v2013_v52 = vld [vmem:[%s2689_s2 + $0x15c] ss:$24 sps:$4 sm:$0xff]   ;;  %v2015_v53 = vld [vmem:[%s2689_s2 + $0x158] ss:$24 sps:$4 sm:$0xff]   ;;  %v2347_v56 = vld [vmem:[%s2691_s4 + $0x8] sm:$0xff]   ;;  %s364_s28 = sand.u32 1, %s2070_s30  }
  0x2d   : > { %v2355_v57 = vld [vmem:[%s2691_s4 + $0x10] sm:$0xff]   ;;  %v2362_v58 = vld [vmem:[%s2691_s4 + $0x18] sm:$0xff]   ;;  %v2369_v59 = vld [vmem:[%s2691_s4 + $0x20] sm:$0xff]   ;;  %s2485_s29 = sshll.u32 %s364_s28, 5  ;;  %s2492_s15 = sshll.u32 %s364_s28, 4 }
  0x2e   : > { %757 = vmatpush1.bf16.msra.mxu0 %v1958_v14  ;;  %v2377_v60 = vld [vmem:[%s2691_s4 + $0x28] sm:$0xff]   ;;  %v2384_v61 = vld [vmem:[%s2691_s4 + $0x30] sm:$0xff]   ;;  %v2391_v62 = vld [vmem:[%s2691_s4 + $0x38] sm:$0xff]   ;;  %s2488_s11 = scalar_lea.vmem [#allocation3], %s2485_s29  ;;  %s366_s30 = scalar_lea.vmem [#allocation2], %s2492_s15 }
  0x2f   : > { %758 = vmatprep.subr.bf16.mxu0 %v1959_v15  ;;  %796 = vmatpush1.bf16.msra.mxu1 %v2003_v45  ;;  %v2399_v63 = vld [vmem:[%s2690_s3] ss:$8 sps:$4 sm:$0xff]   ;;  %v2404_v0 = vld [vmem:[%s2690_s3 + $0x4] ss:$8 sps:$4 sm:$0xff]   ;;  %v2409_v1 = vld [vmem:[%s2690_s3 + $0x14] ss:$8 sps:$4 sm:$0xff]  }
  0x30   : > { %797 = vmatprep.subr.bf16.mxu1 %v2004_v46  ;;  %v2416_v2 = vld [vmem:[%s2690_s3 + $0x10] ss:$8 sps:$4 sm:$0xff]   ;;  %v2422_v3 = vld [vmem:[%s2690_s3 + $0x24] ss:$8 sps:$4 sm:$0xff]   ;;  %v2428_v4 = vld [vmem:[%s2690_s3 + $0x20] ss:$8 sps:$4 sm:$0xff]  }
  0x31   : > { %v2434_v5 = vld [vmem:[%s2690_s3 + $0x34] ss:$8 sps:$4 sm:$0xff]   ;;  %v2440_v7 = vld [vmem:[%s2690_s3 + $0x30] ss:$8 sps:$4 sm:$0xff]   ;;  %v2446_v8 = vld [vmem:[%s2690_s3 + $0x44] ss:$8 sps:$4 sm:$0xff]  }
  0x32   : > { %759 = vmatpush1.bf16.msra.mxu0 %v1961_v16  ;;  %v2452_v9 = vld [vmem:[%s2690_s3 + $0x40] ss:$8 sps:$4 sm:$0xff]   ;;  %v2458_v10 = vld [vmem:[%s2690_s3 + $0x54] ss:$8 sps:$4 sm:$0xff]   ;;  %v2466_v12 = vld [vmem:[%s2690_s3 + $0x50] ss:$8 sps:$4 sm:$0xff]  }
  0x33   : > { %760 = vmatprep.subr.bf16.mxu0 %v1962_v17  ;;  %798 = vmatpush1.bf16.msra.mxu1 %v2006_v47  ;;  %v2474_v14 = vld [vmem:[%s2690_s3 + $0x64] ss:$8 sps:$4 sm:$0xff]   ;;  %v2480_v17 = vld [vmem:[%s2690_s3 + $0x60] ss:$8 sps:$4 sm:$0xff]   ;;  %s2538_s22 = scalar_lea.vmem [#allocation5], %s2492_s15  ;;  %s2561_s23 = scalar_lea.vmem [#allocation4], %s2485_s29 }
  0x34   : > { %799 = vmatprep.subr.bf16.mxu1 %v2007_v48  ;;  %v2497_v25 = vld [vmem:[%s366_s30] sm:$0xff]   ;;  %s2586_s24 = scalar_lea.vmem [#allocation6], %s2492_s15  ;;  %s1705_s25 = sshll.u32 %s2216_s19, 3 }
  0x35   : > { %s425_s28 = scalar_lea.vmem %s2696_s9, %s1705_s25  ;;  %s1799_s19 = sshll.u32 (%p2164_p5), %s2149_s12, 4 }
  0x36   : > { %761 = vmatpush1.bf16.msra.mxu0 %v1964_v18 }
  0x37   : > { %762 = vmatprep.subr.bf16.mxu0 %v1965_v19  ;;  %800 = vmatpush1.bf16.msra.mxu1 %v2009_v49 }
  0x38   : > { %801 = vmatprep.subr.bf16.mxu1 %v2010_v50 }
  0x3a   : > { %763 = vmatpush1.bf16.msra.mxu0 %v1967_v24 }
  0x3b   : > { %830 = vmatprep.subr.bf16.mxu0 %v1970_v26  ;;  %802 = vmatpush1.bf16.msra.mxu1 %v2012_v51  ;;  %v878_v26 = vunpack.c.l.bf16 %v2497_v25 }
  0x3c   : > { %803 = vmatprep.subr.bf16.mxu1 %v2013_v52 }
  0x3d   : > { %781 = vmatmul.mubr.bf16.vlgmr.msra.gmra.mrb[0].mxu0 %v2252_v27 }
  0x3e   : > { %831 = vmatpush1.bf16.msra.mxu0 %v1968_v28  ;;  %862 = vmatprep.mubr.bf16.mxu0 %v2080_v6 }
  0x3f   : > { %832 = vmatprep.subr.bf16.mxu0 %v1973_v29  ;;  %804 = vmatpush1.bf16.msra.mxu1 %v2015_v53  ;;  %v1105_v53 = vunpack.c.h.bf16 %v2497_v25 }
  0x40   : > { %1837 = vmatprep.subr.bf16.mxu1 %v2081_v55 }
  0x42   : > { %833 = vmatpush1.bf16.msra.mxu0 %v1971_v30  ;;  %822 = vmatmul.mubr.bf16.vlgmr.msra.gmra.mrb[0].mxu1 %v2252_v27 }
  0x43   : > { %834 = vmatprep.subr.bf16.mxu0 %v1976_v31  ;;  %1838 = vmatpush3.bf16.msra.mxu1 %v2339_v54 }
  0x44   : > { %1839 = vmatprep.subr.bf16.mxu1 %v2081_v55  ;;  %1853 = vmatprep.mubr.msk.bf16.mxu1 %vm2082_vm0, %v2081_v55 }
  0x46   : > { %835 = vmatpush1.bf16.msra.mxu0 %v1974_v32 }
  0x47   : > { %836 = vmatprep.subr.bf16.mxu0 %v1979_v33  ;;  %1840 = vmatpush3.bf16.msra.mxu1 %v2347_v56 }
  0x48   : > { %1841 = vmatprep.subr.bf16.mxu1 %v2081_v55 }
  0x4a   : > { %837 = vmatpush1.bf16.msra.mxu0 %v1977_v34 }
  0x4b   : > { %838 = vmatprep.subr.bf16.mxu0 %v1982_v35  ;;  %1842 = vmatpush3.bf16.msra.mxu1 %v2355_v57  ;;  %v2525_v35 = vld [vmem:[%s2690_s3 + $0x74] ss:$8 sps:$4 sm:$0xff]  }
  0x4c   : > { %1843 = vmatprep.subr.bf16.mxu1 %v2081_v55 }
  0x4e   : > { %839 = vmatpush1.bf16.msra.mxu0 %v1980_v36  ;;  %v2530_v36 = vld [vmem:[%s2690_s3 + $0x70] ss:$8 sps:$4 sm:$0xff]  }
  0x4f   : > { %840 = vmatprep.subr.bf16.mxu0 %v1985_v37  ;;  %1844 = vmatpush3.bf16.msra.mxu1 %v2362_v58 }
  0x50   : > { %1845 = vmatprep.subr.bf16.mxu1 %v2081_v55 }
  0x52   : > { %841 = vmatpush1.bf16.msra.mxu0 %v1983_v38 }
  0x53   : > { %842 = vmatprep.subr.bf16.mxu0 %v1988_v39  ;;  %1846 = vmatpush3.bf16.msra.mxu1 %v2369_v59 }
  0x54   : > { %1847 = vmatprep.subr.bf16.mxu1 %v2081_v55 }
  0x56   : > { %843 = vmatpush1.bf16.msra.mxu0 %v1986_v40 }
  0x57   : > { %844 = vmatprep.subr.bf16.mxu0 %v1991_v41  ;;  %1848 = vmatpush3.bf16.msra.mxu1 %v2377_v60 }
  0x58   : > { %1849 = vmatprep.subr.bf16.mxu1 %v2081_v55 }
  0x5a   : > { %845 = vmatpush1.bf16.msra.mxu0 %v1989_v42 }
  0x5b   : > { %1850 = vmatpush3.bf16.msra.mxu1 %v2384_v61  ;;  %1054 = vmatprep.subr.bf16.mxu0 %v2404_v0 }
  0x5c   : > { %1851 = vmatprep.subr.bf16.mxu1 %v2081_v55 }
  0x5d   : > { %863 = vmatmul.mubr.bf16.vlgmr.msra.gmra.mrb[4].mxu0 %v2252_v27 }
  0x5e   : > { %1086 = vmatprep.mubr.bf16.mxu0 %v2080_v6  ;;  %1055 = vmatpush1.bf16.msra.mxu0 %v2399_v63 }
  0x5f   : > { %1852 = vmatpush3.bf16.msra.mxu1 %v2391_v62  ;;  %1056 = vmatprep.subr.bf16.mxu0 %v2409_v1 }
  0x60   : > { %1857 = vmatprep.subr.bf16.mxu1 %v2081_v55 }
  0x62   : > { %1057 = vmatpush1.bf16.msra.mxu0 %v2416_v2 }
  0x63   : > { %1058 = vmatprep.subr.bf16.mxu0 %v2422_v3 }
  0x66   : > { %1059 = vmatpush1.bf16.msra.mxu0 %v2428_v4 }
  0x67   : > { %1060 = vmatprep.subr.bf16.mxu0 %v2434_v5 }
  0x6a   : > { %1061 = vmatpush1.bf16.msra.mxu0 %v2440_v7 }
  0x6b   : > { %1062 = vmatprep.subr.bf16.mxu0 %v2446_v8 }
  0x6e   : > { %1063 = vmatpush1.bf16.msra.mxu0 %v2452_v9 }
  0x6f   : > { %1064 = vmatprep.subr.bf16.mxu0 %v2458_v10 }
  0x72   : > { %1065 = vmatpush1.bf16.msra.mxu0 %v2466_v12 }
  0x73   : > { %1066 = vmatprep.subr.bf16.mxu0 %v2474_v14 }
  0x76   : > { %1067 = vmatpush1.bf16.msra.mxu0 %v2480_v17 }
  0x77   : > { %1068 = vmatprep.subr.bf16.mxu0 %v2525_v35 }
  0x7a   : > { %1069 = vmatpush1.bf16.msra.mxu0 %v2530_v36 }
  0x7b   : > { %1152 = vmatprep.subr.bf16.mxu0 %v2404_v0 }
 0x110   : > { %v2460_v11 = vpop.f32.mrb[0].mxu0 }
 0x111   : > { %v2468_v13 = vpop.f32.mrb[1].mxu0 }
 0x112   : > { %v786_v15 = vpop.f32.mrb[2].mxu0 }
 0x113   : > { %v787_v16 = vpop.f32.mrb[3].mxu0 }
 0x115   : > { %v2518_v31 = vpop.f32.mrb[0].mxu1 }
 0x116   : > { %v2520_v32 = vpop.f32.mrb[1].mxu1 }
 0x117   : > { %v827_v33 = vpop.f32.mrb[2].mxu1 }
 0x118   : > { %v828_v34 = vpop.f32.mrb[3].mxu1 }
 0x130   : > { %v864_v18 = vpop.f32.mrb[4].mxu0 }
 0x131   : > { %872 = vst [vmem:[%s2488_s11] sm:$0xff] %v864_v18  ;;  %v866_v19 = vpop.f32.mrb[5].mxu0 }
 0x132   : > { %v871_v20 = vmax.f32 %v866_v19, -13.815511  ;;  %v868_v21 = vpop.f32.mrb[6].mxu0 }
 0x133   : > { %v869_v22 = vpop.f32.mrb[7].mxu0 }
 0x134   : > { %873 = vst [vmem:[%s2488_s11 + $0x8] sm:$0xff] %v871_v20  ;;  %v874_v23 = vmul.f32 0.5, %v871_v20 }
 0x136   : > { %v875_v24 = vmul.f32 1.442695, %v874_v23 }
 0x138   : > { %2048 = vpow2.f32 %v875_v24 }
 0x142   : > { %v2049_v27 = vpop.eup %2048 }
 0x143   : > { %v879_v28 = vmul.f32 %v2049_v27, %v878_v26 }
 0x145   : > { %v880_v29 = vadd.f32 %v879_v28, %v864_v18 }
 0x147   : > { %v881_v30 = vpack.c.bf16 %v880_v29, %v880_v29 }
 0x149   : > { %1854 = vmatmul.mubr.bf16.vlgmr.msra.gmra.mrb[4].mxu1 %v881_v30 }
 0x14a   : > { %1858 = vmatpush3.bf16.msra.mxu1 %v2339_v54  ;;  %1873 = vmatprep.mubr.msk.bf16.mxu1 %vm2082_vm0, %v2081_v55 }
 0x14b   : > { %1859 = vmatprep.subr.bf16.mxu1 %v2081_v55 }
 0x14e   : > { %1860 = vmatpush3.bf16.msra.mxu1 %v2347_v56 }
 0x14f   : > { %1861 = vmatprep.subr.bf16.mxu1 %v2081_v55 }
 0x152   : > { %1862 = vmatpush3.bf16.msra.mxu1 %v2355_v57 }
 0x153   : > { %1863 = vmatprep.subr.bf16.mxu1 %v2081_v55 }
 0x156   : > { %1864 = vmatpush3.bf16.msra.mxu1 %v2362_v58 }
 0x157   : > { %1865 = vmatprep.subr.bf16.mxu1 %v2081_v55 }
 0x15a   : > { %1866 = vmatpush3.bf16.msra.mxu1 %v2369_v59 }
 0x15b   : > { %1867 = vmatprep.subr.bf16.mxu1 %v2081_v55 }
 0x15e   : > { %1868 = vmatpush3.bf16.msra.mxu1 %v2377_v60 }
 0x15f   : > { %1869 = vmatprep.subr.bf16.mxu1 %v2081_v55 }
 0x162   : > { %1870 = vmatpush3.bf16.msra.mxu1 %v2384_v61 }
 0x163   : > { %1871 = vmatprep.subr.bf16.mxu1 %v2081_v55 }
 0x166   : > { %1872 = vmatpush3.bf16.msra.mxu1 %v2391_v62 }
 0x167   : > { %1877 = vmatprep.subr.bf16.mxu1 %v2081_v55 }
 0x21c   : > { %v964_v37 = vpop.f32.mrb[4].mxu1 }
 0x21d   : > { %v970_v38 = vadd.f32 %v964_v37, %v2468_v13  ;;  %v971_v39 = vadd.f32 %v964_v37, %v2460_v11  ;;  %v1855_v40 = vpop.f32.mrb[5].mxu1 }
 0x21e   : > { %v967_v41 = vpop.f32.mrb[6].mxu1 }
 0x21f   : > { %972 = vst [vmem:[%s2538_s22] sm:$0xff] %v971_v39  ;;  %v973_v42 = vpack.c.bf16 %v970_v38, %v970_v38  ;;  %v1856_v43 = vpop.f32.mrb[7].mxu1 }
 0x220   : > { %v1393_v43 = vld [vmem:[%s2488_s11 + $0x8] sm:$0xff] (%p2164_p5) }
 0x221   : > { %1087 = vmatmul.mubr.bf16.vlgmr.msra.gmra.mrb[8].mxu0 %v973_v42  ;;  %v1391_v42 = vld [vmem:[%s2488_s11] sm:$0xff] (%p2164_p5) }
 0x222   : > { %1153 = vmatpush1.bf16.msra.mxu0 %v2399_v63  ;;  %1184 = vmatprep.mubr.bf16.mxu0 %v2080_v6 }
 0x223   : > { %1154 = vmatprep.subr.bf16.mxu0 %v2409_v1 }
 0x226   : > { %1155 = vmatpush1.bf16.msra.mxu0 %v2416_v2 }
 0x227   : > { %1156 = vmatprep.subr.bf16.mxu0 %v2422_v3 }
 0x22a   : > { %1157 = vmatpush1.bf16.msra.mxu0 %v2428_v4 }
 0x22b   : > { %1158 = vmatprep.subr.bf16.mxu0 %v2434_v5 }
 0x22e   : > { %1159 = vmatpush1.bf16.msra.mxu0 %v2440_v7 }
 0x22f   : > { %1160 = vmatprep.subr.bf16.mxu0 %v2446_v8 }
 0x232   : > { %1161 = vmatpush1.bf16.msra.mxu0 %v2452_v9 }
 0x233   : > { %1162 = vmatprep.subr.bf16.mxu0 %v2458_v10 }
 0x236   : > { %1163 = vmatpush1.bf16.msra.mxu0 %v2466_v12 }
 0x237   : > { %1164 = vmatprep.subr.bf16.mxu0 %v2474_v14 }
 0x23a   : > { %1165 = vmatpush1.bf16.msra.mxu0 %v2480_v17 }
 0x23b   : > { %1166 = vmatprep.subr.bf16.mxu0 %v2525_v35 }
 0x23e   : > { %1167 = vmatpush1.bf16.msra.mxu0 %v2530_v36 }
 0x23f   : > { %1254 = vmatprep.subr.bf16.mxu0 %v2404_v0 }
 0x2f4   : > { %v1088_v44 = vpop.f32.mrb[8].mxu0 }
 0x2f5   : > { %v1095_v45 = vadd.f32 %v1088_v44, %v2518_v31  ;;  %v1090_v46 = vpop.f32.mrb[9].mxu0 }
 0x2f6   : > { %v1096_v47 = vadd.f32 %v1090_v46, %v2520_v32  ;;  %v1092_v48 = vpop.f32.mrb[10].mxu0 }
 0x2f7   : > { %1098 = vst [vmem:[%s2561_s23] sm:$0xff] %v1095_v45  ;;  %v1093_v49 = vpop.f32.mrb[11].mxu0 }
 0x2f8   : > { %v1097_v50 = vmax.f32 %v1096_v47, -13.815511 }
 0x2fa   : > { %1099 = vst [vmem:[%s2561_s23 + $0x8] sm:$0xff] %v1097_v50  ;;  %v1100_v51 = vmul.f32 0.5, %v1097_v50 }
 0x2fc   : > { %v1101_v52 = vmul.f32 1.442695, %v1100_v51 }
 0x2fe   : > { %2050 = vpow2.f32 %v1101_v52 }
 0x308   : > { %v2051_v0 = vpop.eup %2050 }
 0x309   : > { %v1106_v15 = vmul.f32 %v2051_v0, %v1105_v53 }
 0x30b   : > { %v1107_v16 = vadd.f32 %v1106_v15, %v1095_v45 }
 0x30d   : > { %v1108_v18 = vpack.c.bf16 %v1107_v16, %v1107_v16 }
 0x30f   : > { %1874 = vmatmul.mubr.bf16.vlgmr.msra.gmra.mrb[8].mxu1 %v1108_v18 }
 0x310   : > { %1878 = vmatpush3.bf16.msra.mxu1 %v2339_v54  ;;  %1893 = vmatprep.mubr.msk.bf16.mxu1 %vm2082_vm0, %v2081_v55 }
 0x311   : > { %1879 = vmatprep.subr.bf16.mxu1 %v2081_v55 }
 0x314   : > { %1880 = vmatpush3.bf16.msra.mxu1 %v2347_v56 }
 0x315   : > { %1881 = vmatprep.subr.bf16.mxu1 %v2081_v55 }
 0x318   : > { %1882 = vmatpush3.bf16.msra.mxu1 %v2355_v57 }
 0x319   : > { %1883 = vmatprep.subr.bf16.mxu1 %v2081_v55 }
 0x31c   : > { %1884 = vmatpush3.bf16.msra.mxu1 %v2362_v58 }
 0x31d   : > { %1885 = vmatprep.subr.bf16.mxu1 %v2081_v55 }
 0x320   : > { %1886 = vmatpush3.bf16.msra.mxu1 %v2369_v59 }
 0x321   : > { %1887 = vmatprep.subr.bf16.mxu1 %v2081_v55 }
 0x324   : > { %1888 = vmatpush3.bf16.msra.mxu1 %v2377_v60 }
 0x325   : > { %1889 = vmatprep.subr.bf16.mxu1 %v2081_v55 }
 0x328   : > { %1890 = vmatpush3.bf16.msra.mxu1 %v2384_v61 }
 0x329   : > { %1891 = vmatprep.subr.bf16.mxu1 %v2081_v55 }
 0x32c   : > { %1892 = vmatpush3.bf16.msra.mxu1 %v2391_v62 }
 0x32d   : > { %1897 = vmatprep.subr.bf16.mxu1 %v2081_v55 }
 0x3e2   : > { %v1143_v19 = vpop.f32.mrb[8].mxu1 }
 0x3e3   : > { %v1149_v20 = vadd.f32 %v1143_v19, %v2460_v11  ;;  %v1875_v21 = vpop.f32.mrb[9].mxu1 }
 0x3e4   : > { %v1146_v22 = vpop.f32.mrb[10].mxu1 }
 0x3e5   : > { %1150 = vst [vmem:[%s2586_s24] sm:$0xff] %v1149_v20  ;;  %v1151_v23 = vpack.c.bf16 %v1149_v20, %v1149_v20  ;;  %v1876_v24 = vpop.f32.mrb[11].mxu1 }
 0x3e7   : > { %1185 = vmatmul.mubr.bf16.vlgmr.msra.gmra.mrb[12].mxu0 %v1151_v23 }
 0x3e8   : > { %1255 = vmatpush1.bf16.msra.mxu0 %v2399_v63  ;;  %1286 = vmatprep.mubr.bf16.mxu0 %v2080_v6 }
 0x3e9   : > { %1256 = vmatprep.subr.bf16.mxu0 %v2409_v1 }
 0x3ec   : > { %1257 = vmatpush1.bf16.msra.mxu0 %v2416_v2 }
 0x3ed   : > { %1258 = vmatprep.subr.bf16.mxu0 %v2422_v3 }
 0x3f0   : > { %1259 = vmatpush1.bf16.msra.mxu0 %v2428_v4 }
 0x3f1   : > { %1260 = vmatprep.subr.bf16.mxu0 %v2434_v5 }
 0x3f4   : > { %1261 = vmatpush1.bf16.msra.mxu0 %v2440_v7 }
 0x3f5   : > { %1262 = vmatprep.subr.bf16.mxu0 %v2446_v8 }
 0x3f8   : > { %1263 = vmatpush1.bf16.msra.mxu0 %v2452_v9  ;;  %v1781_v9 = vld [vmem:[%s366_s30 + $0x8] sm:$0xff]   ;;  %s1378_s30 = scalar_lea.vmem (%p2164_p5), %s2692_s5, %s1799_s19 }
 0x3f9   : > { %1264 = vmatprep.subr.bf16.mxu0 %v2458_v10  ;;  %v1204_v10 = vunpack.c.l.bf16 %v1781_v9  ;;  %v1306_v34 = vunpack.c.h.bf16 %v1781_v9  ;;  %1392 = vst [vmem:[%s1378_s30] sm:$0xff] (%p2164_p5), %v1391_v42  ;;  %1394 = vst [vmem:[%s1378_s30 + $0x8] sm:$0xff] (%p2164_p5), %v1393_v43 }
 0x3fc   : > { %1265 = vmatpush1.bf16.msra.mxu0 %v2466_v12 }
 0x3fd   : > { %1266 = vmatprep.subr.bf16.mxu0 %v2474_v14 }
 0x400   : > { %1267 = vmatpush1.bf16.msra.mxu0 %v2480_v17 }
 0x401   : > { %1268 = vmatprep.subr.bf16.mxu0 %v2525_v35 }
 0x404   : > { %1269 = vmatpush1.bf16.msra.mxu0 %v2530_v36 }
 0x4ba   : > { %v1186_v6 = vpop.f32.mrb[12].mxu0 }
 0x4bb   : > { %v1193_v63 = vadd.f32 %v1186_v6, %v2518_v31  ;;  %v1188_v1 = vpop.f32.mrb[13].mxu0 }
 0x4bc   : > { %v1194_v2 = vadd.f32 %v1188_v1, %v2520_v32  ;;  %v1190_v3 = vpop.f32.mrb[14].mxu0 }
 0x4bd   : > { %1779 = vst [vmem:[%s2488_s11 + $0x10] sm:$0xff] %v1193_v63  ;;  %v1191_v4 = vpop.f32.mrb[15].mxu0 }
 0x4be   : > { %v1195_v5 = vmax.f32 %v1194_v2, -13.815511 }
 0x4c0   : > { %1780 = vst [vmem:[%s2488_s11 + $0x18] sm:$0xff] %v1195_v5  ;;  %v1199_v7 = vmul.f32 0.5, %v1195_v5 }
 0x4c2   : > { %v1200_v8 = vmul.f32 1.442695, %v1199_v7 }
 0x4c4   : > { %2052 = vpow2.f32 %v1200_v8  ;;  %v1395_v44 = vld [vmem:[%s2488_s11 + $0x10] sm:$0xff] (%p2164_p5) }
 0x4c5   : > { %1396 = vst [vmem:[%s1378_s30 + $0x20] sm:$0xff] (%p2164_p5), %v1395_v44 }
 0x4ce   : > { %v2053_v12 = vpop.eup %2052 }
 0x4cf   : > { %v1205_v14 = vmul.f32 %v2053_v12, %v1204_v10 }
 0x4d1   : > { %v1206_v17 = vadd.f32 %v1205_v14, %v1193_v63 }
 0x4d3   : > { %v1207_v25 = vpack.c.bf16 %v1206_v17, %v1206_v17 }
 0x4d5   : > { %1894 = vmatmul.mubr.bf16.vlgmr.msra.gmra.mrb[12].mxu1 %v1207_v25 }
 0x4d6   : > { %1898 = vmatpush3.bf16.msra.mxu1 %v2339_v54  ;;  %1913 = vmatprep.mubr.msk.bf16.mxu1 %vm2082_vm0, %v2081_v55 }
 0x4d7   : > { %1899 = vmatprep.subr.bf16.mxu1 %v2081_v55 }
 0x4da   : > { %1900 = vmatpush3.bf16.msra.mxu1 %v2347_v56 }
 0x4db   : > { %1901 = vmatprep.subr.bf16.mxu1 %v2081_v55 }
 0x4de   : > { %1902 = vmatpush3.bf16.msra.mxu1 %v2355_v57 }
 0x4df   : > { %1903 = vmatprep.subr.bf16.mxu1 %v2081_v55 }
 0x4e2   : > { %1904 = vmatpush3.bf16.msra.mxu1 %v2362_v58 }
 0x4e3   : > { %1905 = vmatprep.subr.bf16.mxu1 %v2081_v55 }
 0x4e6   : > { %1906 = vmatpush3.bf16.msra.mxu1 %v2369_v59 }
 0x4e7   : > { %1907 = vmatprep.subr.bf16.mxu1 %v2081_v55 }
 0x4ea   : > { %1908 = vmatpush3.bf16.msra.mxu1 %v2377_v60 }
 0x4eb   : > { %1909 = vmatprep.subr.bf16.mxu1 %v2081_v55 }
 0x4ee   : > { %1910 = vmatpush3.bf16.msra.mxu1 %v2384_v61 }
 0x4ef   : > { %1911 = vmatprep.subr.bf16.mxu1 %v2081_v55 }
 0x4f2   : > { %1912 = vmatpush3.bf16.msra.mxu1 %v2391_v62 }
 0x5a8   : > { %v1242_v54 = vpop.f32.mrb[12].mxu1 }
 0x5a9   : > { %v1248_v56 = vadd.f32 %v1242_v54, %v2468_v13  ;;  %v1249_v57 = vadd.f32 %v1242_v54, %v2460_v11  ;;  %v1895_v58 = vpop.f32.mrb[13].mxu1 }
 0x5aa   : > { %v1245_v59 = vpop.f32.mrb[14].mxu1 }
 0x5ab   : > { %1782 = vst [vmem:[%s2538_s22 + $0x8] sm:$0xff] %v1249_v57  ;;  %1252 = vst [vmem:[%s425_s28] sm:$0xff] %v1248_v56  ;;  %v1253_v60 = vpack.c.bf16 %v1248_v56, %v1248_v56  ;;  %v1896_v55 = vpop.f32.mrb[15].mxu1 }
 0x5ad   : > { %1287 = vmatmul.mubr.bf16.vlgmr.msra.gmra.mrb[16].mxu0 %v1253_v60 }
 0x680   : > { %v1288_v61 = vpop.f32.mrb[16].mxu0 }
 0x681   : > { %v1295_v62 = vadd.f32 %v1288_v61, %v2518_v31  ;;  %v1290_v26 = vpop.f32.mrb[17].mxu0 }
 0x682   : > { %v1296_v27 = vadd.f32 %v1290_v26, %v2520_v32  ;;  %v1292_v28 = vpop.f32.mrb[18].mxu0 }
 0x683   : > { %1783 = vst [vmem:[%s2561_s23 + $0x10] sm:$0xff] %v1295_v62  ;;  %v1293_v29 = vpop.f32.mrb[19].mxu0 }
 0x684   : > { %v1297_v13 = vmax.f32 %v1296_v27, -13.815511 }
 0x686   : > { %1784 = vst [vmem:[%s2561_s23 + $0x18] sm:$0xff] %v1297_v13  ;;  %v1301_v30 = vmul.f32 0.5, %v1297_v13 }
 0x688   : > { %v1302_v33 = vmul.f32 1.442695, %v1301_v30 }
 0x68a   : > { %2054 = vpow2.f32 %v1302_v33 }
 0x694   : > { %v2055_v35 = vpop.eup %2054 }
 0x695   : > { %v1307_v36 = vmul.f32 %v2055_v35, %v1306_v34 }
 0x697   : > { %v1308_v37 = vadd.f32 %v1307_v36, %v1295_v62 }
 0x699   : > { %v1309_v38 = vpack.c.bf16 %v1308_v37, %v1308_v37 }
 0x69b   : > { %1914 = vmatmul.mubr.bf16.vlgmr.msra.gmra.mrb[16].mxu1 %v1309_v38 }
 0x76b   : > { %1375 = sbr.rel (!%p2164_p5) target bundleno = 1906 (0x772), region = 85 }
 0x76e   : > { %v1344_v39 = vpop.f32.mrb[16].mxu1 }
 0x76f   : > { %v1350_v31 = vadd.f32 %v1344_v39, %v2460_v11  ;;  %v1915_v40 = vpop.f32.mrb[17].mxu1  ;;  %v1397_v11 = vld [vmem:[%s2488_s11 + $0x18] sm:$0xff] (%p2164_p5) }
 0x770   : > { %v1347_v32 = vpop.f32.mrb[18].mxu1  ;;  %1398 = vst [vmem:[%s1378_s30 + $0x28] sm:$0xff] (%p2164_p5), %v1397_v11 }
 0x771   : > { %1786 = vst [vmem:[%s2586_s24 + $0x8] sm:$0xff] %v1350_v31  ;;  %v1916_v41 = vpop.f32.mrb[19].mxu1 }
 0x772 PF: > { %1404 = sbr.rel (!%p2164_p5) target bundleno = 1913 (0x779), region = 108  ;;  %s1800_s18 = sshll.u32 (%p2164_p5), %s2149_s12, 4  ;;  %v1420_v45 = vld [vmem:[%s2561_s23] sm:$0xff] (%p2164_p5)  ;;  %v1422_v46 = vld [vmem:[%s2561_s23 + $0x8] sm:$0xff] (%p2164_p5)  ;;  %v1424_v47 = vld [vmem:[%s2561_s23 + $0x10] sm:$0xff] (%p2164_p5) }
 0x773   : > { %s1407_s11 = scalar_lea.vmem (%p2164_p5), %s2693_s6, %s1800_s18  ;;  %v1426_v48 = vld [vmem:[%s2561_s23 + $0x18] sm:$0xff] (%p2164_p5) }
 0x774   : > { %1421 = vst [vmem:[%s1407_s11] sm:$0xff] (%p2164_p5), %v1420_v45  ;;  %1423 = vst [vmem:[%s1407_s11 + $0x8] sm:$0xff] (%p2164_p5), %v1422_v46 }
 0x775   : > { %1425 = vst [vmem:[%s1407_s11 + $0x20] sm:$0xff] (%p2164_p5), %v1424_v47  ;;  %1427 = vst [vmem:[%s1407_s11 + $0x28] sm:$0xff] (%p2164_p5), %v1426_v48 }
 0x779 PF: > { %1433 = sbr.rel (!%p2164_p5) target bundleno = 1920 (0x780), region = 131  ;;  %s1795_s21 = sshll.u32 (%p2164_p5), %s2149_s12, 3  ;;  %v1465_v49 = vld [vmem:[%s2538_s22] sm:$0xff] (%p2164_p5)  ;;  %v1467_v50 = vld [vmem:[%s2538_s22 + $0x8] sm:$0xff] (%p2164_p5) }
 0x77a   : > { %s1435_s27 = scalar_lea.vmem (%p2164_p5), %s2694_s7, %s1795_s21 }
 0x77b   : > { %1466 = vst [vmem:[%s1435_s27] sm:$0xff] (%p2164_p5), %v1465_v49  ;;  %1468 = vst [vmem:[%s1435_s27 + $0x10] sm:$0xff] (%p2164_p5), %v1467_v50 }
 0x780 PF: > { %1474 = sbr.rel (!%p2164_p5) target bundleno = 1927 (0x787), region = 169  ;;  %s1796_s23 = sshll.u32 (%p2164_p5), %s2149_s12, 3  ;;  %v1506_v51 = vld [vmem:[%s2586_s24] sm:$0xff] (%p2164_p5)  ;;  %v1508_v52 = vld [vmem:[%s2586_s24 + $0x8] sm:$0xff] (%p2164_p5) }
 0x781   : > { %s1476_s22 = scalar_lea.vmem (%p2164_p5), %s2695_s8, %s1796_s23 }
 0x782   : > { %1507 = vst [vmem:[%s1476_s22] sm:$0xff] (%p2164_p5), %v1506_v51  ;;  %1509 = vst [vmem:[%s1476_s22 + $0x10] sm:$0xff] (%p2164_p5), %v1508_v52 }
 0x787 PF: > { %p17_p11 = scmp.ge.s32.totalorder %s2152_s13, 4   ;;  %s2698_s30 = smov %s2074_s10 }
 0x788   : > { %s2699_s10 = smov %s2162_s16  ;;  %s2700_s11 = smov %s2152_s13 }
 0x789   :  { %19 = sbr.rel (!%p17_p11) target bundleno = 2 (0x2), region = 296 }

</bundles_post_ra>
